<compile_context>
chip_gen: v7x
topology: tpu7x:2x2x1
jax: 0.10.0
libtpu: 0.0.40
codegen_flags: <defaults>
</compile_context>

<pallas_src>
import functools

import jax
import jax.numpy as jnp
from jax import lax
from jax.experimental import pallas as pl
from jax.experimental.pallas import tpu as pltpu


# ----------------------------------------------------------------------------
# Pallas kernels: 3x3 conv as 9 shifted matmuls + bias [+ residual matmul] + ReLU
# ----------------------------------------------------------------------------
def _conv_bn_act_kernel(x_ref, w_ref, b_ref, o_ref, *, taps, cin, apply_relu):
    # x_ref: (n_phase, Lpad, Cin) bf16   (squeezed batch dim)
    # w_ref: (9*Cin, tn) bf16 (BN scale folded)
    # b_ref: (1, tn) f32
    # o_ref: (Lout, tn)
    lout, tn = o_ref.shape
    acc = jnp.zeros((lout, tn), jnp.float32)
    for t, (ph, off) in enumerate(taps):
        acc = acc + jnp.dot(
            x_ref[ph, off:off + lout, :],
            w_ref[t * cin:(t + 1) * cin, :],
            preferred_element_type=jnp.float32)
    y = acc + b_ref[...]
    if apply_relu:
        y = jnp.maximum(y, 0.0)
    o_ref[...] = y.astype(o_ref.dtype)


def _conv_bn_res_act_kernel(x_ref, w_ref, r_ref, wr_ref, b_ref, o_ref, *,
                            taps, cin, apply_relu):
    # Same as above, plus a fused residual-branch matmul:
    #   r_ref: (Lout, Cr) bf16,  wr_ref: (Cr, tn) bf16 (1x1-conv / identity).
    lout, tn = o_ref.shape
    acc = jnp.dot(r_ref[...], wr_ref[...], preferred_element_type=jnp.float32)
    for t, (ph, off) in enumerate(taps):
        acc = acc + jnp.dot(
            x_ref[ph, off:off + lout, :],
            w_ref[t * cin:(t + 1) * cin, :],
            preferred_element_type=jnp.float32)
    y = acc + b_ref[...]
    if apply_relu:
        y = jnp.maximum(y, 0.0)
    o_ref[...] = y.astype(o_ref.dtype)


# ----------------------------------------------------------------------------
# Input prep: pad once, phase-split for the stride, flatten space.
# Each 3x3 tap then becomes a contiguous slice of the flat image.
# ----------------------------------------------------------------------------
def _prep_shift_input(x_nhwc, ksize, pad, stride):
    N, H, W, C = x_nhwc.shape
    s = stride
    xp = jnp.pad(x_nhwc, ((0, 0), (pad, pad), (pad, pad), (0, 0)))
    Hp0, Wp0 = H + 2 * pad, W + 2 * pad
    Hp = -(-Hp0 // s) * s
    Wp = -(-Wp0 // s) * s
    if Hp != Hp0 or Wp != Wp0:
        xp = jnp.pad(xp, ((0, 0), (0, Hp - Hp0), (0, Wp - Wp0), (0, 0)))
    Hph, Wph = Hp // s, Wp // s

    # phase (p, q) image = xp[:, p::s, q::s, :]  -> stack as (N, s*s, Hph, Wph, C)
    phases = xp.reshape(N, Hph, s, Wph, s, C).transpose(0, 2, 4, 1, 3, 5)
    flat = phases.reshape(N, s * s, Hph * Wph, C)

    Ho = (H + 2 * pad - ksize) // s + 1
    Wo = (W + 2 * pad - ksize) // s + 1
    Lout = Ho * Wph            # extended width Wph >= Wo; extra cols discarded

    taps = []
    max_end = Hph * Wph
    for dy in range(ksize):
        for dx in range(ksize):
            p = (dy % s) * s + (dx % s)
            off = (dy // s) * Wph + (dx // s)
            taps.append((p, off))
            max_end = max(max_end, off + Lout)
    Lpad = -(-max_end // 8) * 8
    if Lpad > Hph * Wph:
        flat = jnp.pad(flat, ((0, 0), (0, 0), (0, Lpad - Hph * Wph), (0, 0)))
    return flat.astype(jnp.bfloat16), taps, Ho, Wo, Wph, Lout


# ----------------------------------------------------------------------------
# Fused 3x3 conv + folded BN + optional fused shortcut + ReLU
# ----------------------------------------------------------------------------
def fused_conv3x3_bn(x_nhwc, w_oihw, bn_scale, bn_bias, stride, *,
                     residual_img=None, w_res=None, res_bias=None,
                     apply_relu=True, out_dtype=jnp.float32):
    """x_nhwc (N,H,W,Cin) -> (N,Ho,Wo,Cout); residual added as residual_img @ w_res."""
    N, H, W, Cin = x_nhwc.shape
    Cout = w_oihw.shape[0]

    x_flat, taps, Ho, Wo, Wext, Lout = _prep_shift_input(x_nhwc, 3, 1, stride)
    n_ph, Lpad = x_flat.shape[1], x_flat.shape[2]

    # Lane-dense output channels (multiple of 128); sliced off below.
    Cp = max(128, pl.cdiv(Cout, 128) * 128)
    tn = 256 if Cp % 256 == 0 else 128

    # Fold BN scale into the weight matrix (host side), bf16 for the MXU.
    w_mat = jnp.transpose(w_oihw, (2, 3, 1, 0)).reshape(9 * Cin, Cout)
    w_mat = w_mat * bn_scale[None, :]
    w_mat = jnp.pad(w_mat, ((0, 0), (0, Cp - Cout))).astype(jnp.bfloat16)

    bias = bn_bias.astype(jnp.float32)
    if res_bias is not None:
        bias = bias + res_bias.astype(jnp.float32)
    bias = jnp.pad(bias, (0, Cp - Cout)).reshape(1, Cp)

    grid = (N, Cp // tn)
    in_specs = [
        pl.BlockSpec((None, n_ph, Lpad, Cin), lambda n, j: (n, 0, 0, 0)),
        pl.BlockSpec((9 * Cin, tn), lambda n, j: (0, j)),
    ]
    args = [x_flat, w_mat]
    flops = 2 * N * Lout * 9 * Cin * Cp
    bytes_accessed = (x_flat.size + w_mat.size) * 2 + bias.size * 4 \
        + N * Lout * Cp * jnp.dtype(out_dtype).itemsize

    if residual_img is not None:
        Cr = residual_img.shape[-1]
        r = residual_img.astype(jnp.bfloat16)
        r = jnp.pad(r, ((0, 0), (0, 0), (0, Wext - Wo), (0, 0)))
        r_flat = r.reshape(N, Ho * Wext, Cr)                      # (N, Lout, Cr)
        wr = jnp.pad(w_res, ((0, 0), (0, Cp - Cout))).astype(jnp.bfloat16)
        in_specs += [
            pl.BlockSpec((None, Lout, Cr), lambda n, j: (n, 0, 0)),
            pl.BlockSpec((Cr, tn), lambda n, j: (0, j)),
        ]
        args += [r_flat, wr]
        kernel = functools.partial(_conv_bn_res_act_kernel, taps=taps, cin=Cin,
                                   apply_relu=apply_relu)
        flops += 2 * N * Lout * Cr * Cp
        bytes_accessed += (r_flat.size + wr.size) * 2
    else:
        kernel = functools.partial(_conv_bn_act_kernel, taps=taps, cin=Cin,
                                   apply_relu=apply_relu)

    in_specs.append(pl.BlockSpec((1, tn), lambda n, j: (0, j)))
    args.append(bias)

    out = pl.pallas_call(
        kernel,
        out_shape=jax.ShapeDtypeStruct((N, Lout, Cp), out_dtype),
        grid_spec=pltpu.PrefetchScalarGridSpec(
            num_scalar_prefetch=0,
            grid=grid,
            in_specs=in_specs,
            out_specs=pl.BlockSpec((None, Lout, tn), lambda n, j: (n, 0, j)),
        ),
        compiler_params=pltpu.CompilerParams(
            dimension_semantics=("parallel", "parallel"),
            vmem_limit_bytes=48 * 1024 * 1024),   # safe on v5e/v6e/v7x
        cost_estimate=pl.CostEstimate(
            flops=int(flops), transcendentals=0,
            bytes_accessed=int(bytes_accessed)),
    )(*args)

    out = out.reshape(N, Ho, Wext, Cp)[:, :, :Wo, :Cout]
    return out


# ----------------------------------------------------------------------------
# BasicBlock forward (NCHW in / NCHW out, like nn.Conv2d)
# ----------------------------------------------------------------------------
def fold_bn(bn, eps=1e-5):
    scale = bn["gamma"] / jnp.sqrt(bn["var"] + eps)
    bias = bn["beta"] - bn["mean"] * scale
    return scale, bias


def basic_block_forward(x_nchw, params, stride):
    x = jnp.transpose(x_nchw, (0, 2, 3, 1)).astype(jnp.bfloat16)   # NHWC bf16
    N, H, W, Cin = x.shape
    planes = params["conv1_w"].shape[0]

    # conv1 (3x3, stride) + bn1 + relu
    s1, b1 = fold_bn(params["bn1"])
    h1 = fused_conv3x3_bn(x, params["conv1_w"], s1, b1, stride,
                          apply_relu=True, out_dtype=jnp.bfloat16)

    # conv2 (3x3, stride 1) + bn2 + shortcut-add + relu, all fused in one kernel.
    s2, b2 = fold_bn(params["bn2"])
    if stride != 1 or Cin != planes:
        ss, bs = fold_bn(params["bn_sc"])
        w_sc = params["sc_w"].reshape(planes, Cin).T * ss[None, :]   # (Cin, planes)
        res_img = x[:, ::stride, ::stride, :]
        res_bias = bs
    else:
        w_sc = jnp.eye(planes, dtype=jnp.float32)                    # identity shortcut
        res_img = x
        res_bias = None

    out = fused_conv3x3_bn(h1, params["conv2_w"], s2, b2, 1,
                           residual_img=res_img, w_res=w_sc, res_bias=res_bias,
                           apply_relu=True, out_dtype=jnp.float32)
    return jnp.transpose(out, (0, 3, 1, 2))                          # NCHW


# ----------------------------------------------------------------------------
# Pure-JAX reference (lax.conv) mirroring the bf16 input / f32 accumulate path.
# ----------------------------------------------------------------------------
def _ref_conv(x_nhwc, w_oihw, stride, pad):
    return lax.conv_general_dilated(
        x_nhwc, jnp.transpose(w_oihw, (2, 3, 1, 0)).astype(x_nhwc.dtype),
        window_strides=(stride, stride), padding=[(pad, pad), (pad, pad)],
        dimension_numbers=("NHWC", "HWIO", "NHWC"),
        preferred_element_type=jnp.float32)


def basic_block_reference(x_nchw, params, stride):
    x = jnp.transpose(x_nchw, (0, 2, 3, 1)).astype(jnp.bfloat16)
    planes = params["conv1_w"].shape[0]
    s1, b1 = fold_bn(params["bn1"])
    w1 = params["conv1_w"] * s1[:, None, None, None]
    h = jnp.maximum(_ref_conv(x, w1, stride, 1) + b1, 0.0).astype(jnp.bfloat16)
    s2, b2 = fold_bn(params["bn2"])
    w2 = params["conv2_w"] * s2[:, None, None, None]
    out = _ref_conv(h, w2, 1, 1) + b2
    if stride != 1 or x.shape[-1] != planes:
        ss, bs = fold_bn(params["bn_sc"])
        wsc = params["sc_w"] * ss[:, None, None, None]
        sc = _ref_conv(x, wsc, stride, 0) + bs
    else:
        sc = x.astype(jnp.float32)
    out = jnp.maximum(out + sc, 0.0)
    return jnp.transpose(out, (0, 3, 1, 2))


# ----------------------------------------------------------------------------
# Deterministic parameter construction (shapes follow BasicBlock.__init__).
# ----------------------------------------------------------------------------
def make_params(key, in_planes, planes, stride):
    ks = jax.random.split(key, 16)

    def bn_params(k0, k1, k2, k3, c):
        return {
            "gamma": 1.0 + 0.1 * jax.random.normal(k0, (c,), jnp.float32),
            "beta": 0.1 * jax.random.normal(k1, (c,), jnp.float32),
            "mean": 0.1 * jax.random.normal(k2, (c,), jnp.float32),
            "var": 1.0 + 0.1 * jnp.abs(jax.random.normal(k3, (c,), jnp.float32)),
        }

    params = {
        "conv1_w": 0.1 * jax.random.normal(ks[0], (planes, in_planes, 3, 3),
                                           jnp.float32),
        "bn1": bn_params(ks[1], ks[2], ks[3], ks[4], planes),
        "conv2_w": 0.1 * jax.random.normal(ks[5], (planes, planes, 3, 3),
                                           jnp.float32),
        "bn2": bn_params(ks[6], ks[7], ks[8], ks[9], planes),
    }
    if stride != 1 or in_planes != planes:
        params["sc_w"] = 0.1 * jax.random.normal(
            ks[10], (planes, in_planes, 1, 1), jnp.float32)
        params["bn_sc"] = bn_params(ks[11], ks[12], ks[13], ks[14], planes)
    return params


if __name__ == "__main__":
    key = jax.random.PRNGKey(0)

    configs = [
        # (in_planes, planes, stride, H, W)
        (4, 8, 2, 16, 16),   # projection shortcut (downsampling block)
        (8, 8, 1, 16, 16),   # identity shortcut
    ]
    for idx, (in_planes, planes, stride, H, W) in enumerate(configs):
        kx, kp, key = jax.random.split(key, 3)
        x = jax.random.normal(kx, (2, in_planes, H, W), jnp.float32)  # NCHW
        params = make_params(kp, in_planes, planes, stride)

        out = jax.block_until_ready(basic_block_forward(x, params, stride))
        ref = jax.block_until_ready(basic_block_reference(x, params, stride))

        Ho = (H + 2 - 3) // stride + 1
        assert out.shape == ref.shape == (2, planes, Ho, Ho), out.shape
        err = float(jnp.max(jnp.abs(out - ref)))
        # bf16 inputs / f32 accumulation -> slightly looser tolerance than f32.
        assert jnp.allclose(out, ref, rtol=1e-2, atol=1e-2), (idx, err)

    print("KERNEL_OK")
</pallas_src>

<mosaic_0001>
module attributes {stable_mosaic.version = 11 : i64} {
  func.func @_conv_bn_act_kernel(%arg0: i32, %arg1: i32, %arg2: memref<1x4x88x4xbf16, #tpu.memory_space<vmem>>, %arg3: memref<36x128xbf16, #tpu.memory_space<vmem>>, %arg4: memref<1x128xf32, #tpu.memory_space<vmem>>, %arg5: memref<1x72x128xbf16, #tpu.memory_space<vmem>>) attributes {dimension_semantics = [#tpu.dimension_semantics<parallel>, #tpu.dimension_semantics<parallel>], iteration_bounds = array<i64: 2, 1>, scalar_prefetch = 0 : i64, scratch_operands = 0 : i64, tpu.core_type = #tpu.core_type<tc>, window_params = [{transform_indices = @transform_0, window_bounds = array<i64: 1, 4, 88, 4>}, {transform_indices = @transform_1, window_bounds = array<i64: 36, 128>}, {transform_indices = @transform_2, window_bounds = array<i64: 1, 128>}, {transform_indices = @transform_3, window_bounds = array<i64: 1, 72, 128>}]} {
    %cst = arith.constant 0.000000e+00 : f32
    %0 = vector.broadcast %cst : f32 to vector<72x128xf32>
    %c0 = arith.constant 0 : index
    %c0_0 = arith.constant 0 : index
    %c0_1 = arith.constant 0 : index
    %c0_2 = arith.constant 0 : index
    %1 = vector.load %arg2[%c0, %c0_0, %c0_1, %c0_2] : memref<1x4x88x4xbf16, #tpu.memory_space<vmem>>, vector<1x1x72x4xbf16>
    %2 = vector.shape_cast %1 : vector<1x1x72x4xbf16> to vector<72x4xbf16>
    %c0_3 = arith.constant 0 : index
    %c0_4 = arith.constant 0 : index
    %3 = vector.load %arg3[%c0_3, %c0_4] : memref<36x128xbf16, #tpu.memory_space<vmem>>, vector<4x128xbf16>
    %cst_5 = arith.constant dense<0.000000e+00> : vector<72x128xf32>
    %4 = tpu.matmul %2, %3, %cst_5 {dimension_numbers = #tpu.dot_dimension_numbers<[1], [0], [0], [1], [0, 0, 1, 1], [], []>} : vector<72x4xbf16>, vector<4x128xbf16>, vector<72x128xf32> -> vector<72x128xf32>
    %5 = arith.addf %0, %4 : vector<72x128xf32>
    %c0_6 = arith.constant 0 : index
    %c1 = arith.constant 1 : index
    %c0_7 = arith.constant 0 : index
    %c0_8 = arith.constant 0 : index
    %6 = vector.load %arg2[%c0_6, %c1, %c0_7, %c0_8] : memref<1x4x88x4xbf16, #tpu.memory_space<vmem>>, vector<1x1x72x4xbf16>
    %7 = vector.shape_cast %6 : vector<1x1x72x4xbf16> to vector<72x4xbf16>
    %c4 = arith.constant 4 : index
    %c0_9 = arith.constant 0 : index
    %8 = vector.load %arg3[%c4, %c0_9] : memref<36x128xbf16, #tpu.memory_space<vmem>>, vector<4x128xbf16>
    %cst_10 = arith.constant dense<0.000000e+00> : vector<72x128xf32>
    %9 = tpu.matmul %7, %8, %cst_10 {dimension_numbers = #tpu.dot_dimension_numbers<[1], [0], [0], [1], [0, 0, 1, 1], [], []>} : vector<72x4xbf16>, vector<4x128xbf16>, vector<72x128xf32> -> vector<72x128xf32>
    %10 = arith.addf %5, %9 : vector<72x128xf32>
    %c0_11 = arith.constant 0 : index
    %c0_12 = arith.constant 0 : index
    %c1_13 = arith.constant 1 : index
    %c0_14 = arith.constant 0 : index
    %11 = vector.load %arg2[%c0_11, %c0_12, %c1_13, %c0_14] : memref<1x4x88x4xbf16, #tpu.memory_space<vmem>>, vector<1x1x72x4xbf16>
    %12 = vector.shape_cast %11 : vector<1x1x72x4xbf16> to vector<72x4xbf16>
    %c8 = arith.constant 8 : index
    %c0_15 = arith.constant 0 : index
    %13 = vector.load %arg3[%c8, %c0_15] : memref<36x128xbf16, #tpu.memory_space<vmem>>, vector<4x128xbf16>
    %cst_16 = arith.constant dense<0.000000e+00> : vector<72x128xf32>
    %14 = tpu.matmul %12, %13, %cst_16 {dimension_numbers = #tpu.dot_dimension_numbers<[1], [0], [0], [1], [0, 0, 1, 1], [], []>} : vector<72x4xbf16>, vector<4x128xbf16>, vector<72x128xf32> -> vector<72x128xf32>
    %15 = arith.addf %10, %14 : vector<72x128xf32>
    %c0_17 = arith.constant 0 : index
    %c2 = arith.constant 2 : index
    %c0_18 = arith.constant 0 : index
    %c0_19 = arith.constant 0 : index
    %16 = vector.load %arg2[%c0_17, %c2, %c0_18, %c0_19] : memref<1x4x88x4xbf16, #tpu.memory_space<vmem>>, vector<1x1x72x4xbf16>
    %17 = vector.shape_cast %16 : vector<1x1x72x4xbf16> to vector<72x4xbf16>
    %c12 = arith.constant 12 : index
    %c0_20 = arith.constant 0 : index
    %18 = vector.load %arg3[%c12, %c0_20] : memref<36x128xbf16, #tpu.memory_space<vmem>>, vector<4x128xbf16>
    %cst_21 = arith.constant dense<0.000000e+00> : vector<72x128xf32>
    %19 = tpu.matmul %17, %18, %cst_21 {dimension_numbers = #tpu.dot_dimension_numbers<[1], [0], [0], [1], [0, 0, 1, 1], [], []>} : vector<72x4xbf16>, vector<4x128xbf16>, vector<72x128xf32> -> vector<72x128xf32>
    %20 = arith.addf %15, %19 : vector<72x128xf32>
    %c0_22 = arith.constant 0 : index
    %c3 = arith.constant 3 : index
    %c0_23 = arith.constant 0 : index
    %c0_24 = arith.constant 0 : index
    %21 = vector.load %arg2[%c0_22, %c3, %c0_23, %c0_24] : memref<1x4x88x4xbf16, #tpu.memory_space<vmem>>, vector<1x1x72x4xbf16>
    %22 = vector.shape_cast %21 : vector<1x1x72x4xbf16> to vector<72x4xbf16>
    %c16 = arith.constant 16 : index
    %c0_25 = arith.constant 0 : index
    %23 = vector.load %arg3[%c16, %c0_25] : memref<36x128xbf16, #tpu.memory_space<vmem>>, vector<4x128xbf16>
    %cst_26 = arith.constant dense<0.000000e+00> : vector<72x128xf32>
    %24 = tpu.matmul %22, %23, %cst_26 {dimension_numbers = #tpu.dot_dimension_numbers<[1], [0], [0], [1], [0, 0, 1, 1], [], []>} : vector<72x4xbf16>, vector<4x128xbf16>, vector<72x128xf32> -> vector<72x128xf32>
    %25 = arith.addf %20, %24 : vector<72x128xf32>
    %c0_27 = arith.constant 0 : index
    %c2_28 = arith.constant 2 : index
    %c1_29 = arith.constant 1 : index
    %c0_30 = arith.constant 0 : index
    %26 = vector.load %arg2[%c0_27, %c2_28, %c1_29, %c0_30] : memref<1x4x88x4xbf16, #tpu.memory_space<vmem>>, vector<1x1x72x4xbf16>
    %27 = vector.shape_cast %26 : vector<1x1x72x4xbf16> to vector<72x4xbf16>
    %c20 = arith.constant 20 : index
    %c0_31 = arith.constant 0 : index
    %28 = vector.load %arg3[%c20, %c0_31] : memref<36x128xbf16, #tpu.memory_space<vmem>>, vector<4x128xbf16>
    %cst_32 = arith.constant dense<0.000000e+00> : vector<72x128xf32>
    %29 = tpu.matmul %27, %28, %cst_32 {dimension_numbers = #tpu.dot_dimension_numbers<[1], [0], [0], [1], [0, 0, 1, 1], [], []>} : vector<72x4xbf16>, vector<4x128xbf16>, vector<72x128xf32> -> vector<72x128xf32>
    %30 = arith.addf %25, %29 : vector<72x128xf32>
    %c0_33 = arith.constant 0 : index
    %c0_34 = arith.constant 0 : index
    %c9 = arith.constant 9 : index
    %c0_35 = arith.constant 0 : index
    %31 = vector.load %arg2[%c0_33, %c0_34, %c9, %c0_35] : memref<1x4x88x4xbf16, #tpu.memory_space<vmem>>, vector<1x1x72x4xbf16>
    %32 = vector.shape_cast %31 : vector<1x1x72x4xbf16> to vector<72x4xbf16>
    %c24 = arith.constant 24 : index
    %c0_36 = arith.constant 0 : index
    %33 = vector.load %arg3[%c24, %c0_36] : memref<36x128xbf16, #tpu.memory_space<vmem>>, vector<4x128xbf16>
    %cst_37 = arith.constant dense<0.000000e+00> : vector<72x128xf32>
    %34 = tpu.matmul %32, %33, %cst_37 {dimension_numbers = #tpu.dot_dimension_numbers<[1], [0], [0], [1], [0, 0, 1, 1], [], []>} : vector<72x4xbf16>, vector<4x128xbf16>, vector<72x128xf32> -> vector<72x128xf32>
    %35 = arith.addf %30, %34 : vector<72x128xf32>
    %c0_38 = arith.constant 0 : index
    %c1_39 = arith.constant 1 : index
    %c9_40 = arith.constant 9 : index
    %c0_41 = arith.constant 0 : index
    %36 = vector.load %arg2[%c0_38, %c1_39, %c9_40, %c0_41] : memref<1x4x88x4xbf16, #tpu.memory_space<vmem>>, vector<1x1x72x4xbf16>
    %37 = vector.shape_cast %36 : vector<1x1x72x4xbf16> to vector<72x4xbf16>
    %c28 = arith.constant 28 : index
    %c0_42 = arith.constant 0 : index
    %38 = vector.load %arg3[%c28, %c0_42] : memref<36x128xbf16, #tpu.memory_space<vmem>>, vector<4x128xbf16>
    %cst_43 = arith.constant dense<0.000000e+00> : vector<72x128xf32>
    %39 = tpu.matmul %37, %38, %cst_43 {dimension_numbers = #tpu.dot_dimension_numbers<[1], [0], [0], [1], [0, 0, 1, 1], [], []>} : vector<72x4xbf16>, vector<4x128xbf16>, vector<72x128xf32> -> vector<72x128xf32>
    %40 = arith.addf %35, %39 : vector<72x128xf32>
    %c0_44 = arith.constant 0 : index
    %c0_45 = arith.constant 0 : index
    %c10 = arith.constant 10 : index
    %c0_46 = arith.constant 0 : index
    %41 = vector.load %arg2[%c0_44, %c0_45, %c10, %c0_46] : memref<1x4x88x4xbf16, #tpu.memory_space<vmem>>, vector<1x1x72x4xbf16>
    %42 = vector.shape_cast %41 : vector<1x1x72x4xbf16> to vector<72x4xbf16>
    %c32 = arith.constant 32 : index
    %c0_47 = arith.constant 0 : index
    %43 = vector.load %arg3[%c32, %c0_47] : memref<36x128xbf16, #tpu.memory_space<vmem>>, vector<4x128xbf16>
    %cst_48 = arith.constant dense<0.000000e+00> : vector<72x128xf32>
    %44 = tpu.matmul %42, %43, %cst_48 {dimension_numbers = #tpu.dot_dimension_numbers<[1], [0], [0], [1], [0, 0, 1, 1], [], []>} : vector<72x4xbf16>, vector<4x128xbf16>, vector<72x128xf32> -> vector<72x128xf32>
    %45 = arith.addf %40, %44 : vector<72x128xf32>
    %c0_49 = arith.constant 0 : index
    %c0_50 = arith.constant 0 : index
    %46 = vector.load %arg4[%c0_49, %c0_50] : memref<1x128xf32, #tpu.memory_space<vmem>>, vector<1x128xf32>
    %47 = vector.broadcast %46 : vector<1x128xf32> to vector<72x128xf32>
    %48 = arith.addf %45, %47 : vector<72x128xf32>
    %cst_51 = arith.constant 0.000000e+00 : f32
    %49 = vector.broadcast %cst_51 : f32 to vector<72x128xf32>
    %50 = arith.maximumf %48, %49 : vector<72x128xf32>
    %51 = arith.truncf %50 : vector<72x128xf32> to vector<72x128xbf16>
    %c0_52 = arith.constant 0 : index
    %c0_53 = arith.constant 0 : index
    %c0_54 = arith.constant 0 : index
    %52 = vector.load %arg5[%c0_52, %c0_53, %c0_54] : memref<1x72x128xbf16, #tpu.memory_space<vmem>>, vector<1x72x128xbf16>
    %53 = vector.shape_cast %52 : vector<1x72x128xbf16> to vector<72x128xbf16>
    %54 = vector.shape_cast %51 : vector<72x128xbf16> to vector<1x72x128xbf16>
    tpu.vector_store %arg5[%c0_52, %c0_53, %c0_54], %54 {strides = array<i32>} : memref<1x72x128xbf16, #tpu.memory_space<vmem>>, vector<1x72x128xbf16>,
    return
  }
  func.func @transform_0(%arg0: i32, %arg1: i32) -> (i32, i32, i32, i32) {
    %c0_i32 = arith.constant 0 : i32
    %c0_i32_0 = arith.constant 0 : i32
    %c0_i32_1 = arith.constant 0 : i32
    %c0_i32_2 = arith.constant 0 : i32
    return %arg0, %c0_i32, %c0_i32_0, %c0_i32_1 : i32, i32, i32, i32
  }
  func.func @transform_1(%arg0: i32, %arg1: i32) -> (i32, i32) {
    %c0_i32 = arith.constant 0 : i32
    %c0_i32_0 = arith.constant 0 : i32
    return %c0_i32, %arg1 : i32, i32
  }
  func.func @transform_2(%arg0: i32, %arg1: i32) -> (i32, i32) {
    %c0_i32 = arith.constant 0 : i32
    %c0_i32_0 = arith.constant 0 : i32
    return %c0_i32, %arg1 : i32, i32
  }
  func.func @transform_3(%arg0: i32, %arg1: i32) -> (i32, i32, i32) {
    %c0_i32 = arith.constant 0 : i32
    %c0_i32_0 = arith.constant 0 : i32
    return %arg0, %c0_i32, %arg1 : i32, i32, i32
  }
}

</mosaic_0001>

<bundles_post_ra>
// kernel: tpu_custom_call.1
= control target key start
LH: loop header
LB: loop body
LE: loop exit
PB: predicated region body
PF: predicated region fallthrough
CT: control target
= control target key end

     0   :  { %8 = vsyncpa [#allocation3], 0  ;;  %s2883_s0 = inlined_call_operand.vmem [shape: bf16[2,4,88,4], index: 0, kind: input, shape index: {}]   ;;  %s2884_s1 = inlined_call_operand.vmem [shape: bf16[36,128], index: 1, kind: input, shape index: {}]   ;;  %s2885_s2 = inlined_call_operand.vmem [shape: f32[1,128], index: 2, kind: input, shape index: {}]   ;;  %s2886_s3 = inlined_call_operand.hbm [shape: bf16[2,72,128], index: 3, kind: output, shape index: {}]  }
   0x1   :  { %10 = vsyncpa [#allocation3 + $0x1], 0  ;;  %s2398_s12 = smov 0   ;;  %s2400_s13 = smov 0  }
   0x2   :  { %s2402_s14 = smov 0   ;;  %s2404_s15 = smov 0  }
   0x3   :  { %s2406_s16 = smov 0   ;;  %s2408_s17 = smov 0  }
   0x4 LB: > { %s1742_s18 = sadd.s32 4294967295, %s2371_s17   ;;  %s1743_s19 = sadd.s32 4294967294, %s2371_s17   ;;  %s2371_s17 = sphi %s2408_s17, %s16_s17   ;;  %s2367_s16 = sphi %s2406_s16, %s2893_s16   ;;  %s2363_s15 = sphi %s2404_s15, %s2892_s15   ;;  %s2359_s14 = sphi %s2402_s14, %s2891_s14   ;;  %s2355_s13 = sphi %s2400_s13, %s2890_s13   ;;  %s2351_s12 = sphi %s2398_s12, %s2889_s12  }
   0x5   : > { %s28_s20 = sadd.s32 1, %s2367_s16  ;;  %s115_s21 = sadd.s32 1, %s2359_s14 }
   0x6   : > { %p30_p0 = scmp.ge.s32.totalorder %s28_s20, 2  ;;  %p125_p1 = scmp.ne.s32.totalorder %s2359_s14, %s2355_s13 }
   0x7   : > { %p126_p2 = scmp.eq.s32.totalorder %s1742_s18, 1  ;;  %p131_p3 = scmp.ne.s32.totalorder %s2355_s13, %s2351_s12 }
   0x8   : > { %s2895_s20 = smov (%p30_p0, %s28_s20), 0  ;;  %p132_p5 = scmp.eq.s32.totalorder %s1743_s19, 1 }
   0x9   : > { %p2438_p4 = por %p126_p2, %p125_p1  ;;  %s110_s23 = ssub.s32 %s2367_s16, %s2895_s20 }
   0xa   : > { %p1748_p6 = scmp.ge.s32.totalorder %s2371_s17, 1  ;;  %p113_p7 = scmp.eq.s32.totalorder %s110_s23, 0 }
   0xb   : > { %p2445_p8 = por %p132_p5, %p131_p3  ;;  %p171_p9 = scmp.lt.s32.totalorder %s2371_s17, 3 }
   0xc   : > { %s2451_s25 = scalar_select %p113_p7, %s2359_s14, %s115_s21  }
   0xd   : > { %p172_p10 = pnand %p1748_p6, %p171_p9 }
   0xe   : > { %v2248_v0 = vld [vmem:[%s2884_s1] ss:$0 sps:$4 sm:$0xcc] (!%p172_p10)   ;;  %v2373_v1 = vmov (!%p172_p10), 0.0   ;;  %vm279_vm0 = vcmask (!%p172_p10), 1041408   ;;  %p202_p11 = scmp.lt.s32.totalorder (!%p172_p10), %s2363_s15, 1 }
   0xf   : > { %175 = sbr.rel (%p172_p10) target bundleno = 439 (0x1b7), region = 32  ;;  %1986 = vmatprep.subr.bf16.mxu0 (!%p172_p10), %v2373_v1  ;;  %2184 = vmatprep.subr.bf16.mxu1 (!%p172_p10), %v2373_v1  ;;  %v262_v2 = vrot.slane (!%p172_p10), %v2248_v0, 2  ;;  %vm2374_vm1 = vmmov (!%p172_p10), 0   ;;  %v478_v4 = vld [vmem:[%s2884_s1 + $0x4] sm:$0x3] (!%p172_p10)  ;;  %vm263_vm2 = vcmask (!%p172_p10), 31744  }
  0x10   : > { %1988 = vmatprep.mubr.msk.bf16.mxu0 (!%p172_p10), %vm2374_vm1, %v2373_v1  ;;  %2000 = vmatprep.mubr.msk.bf16.mxu1 (!%p172_p10), %vm2374_vm1, %v2373_v1  ;;  %v224_v5 = vld [vmem:[%s2884_s1] sm:$0x3] (!%p172_p10)  ;;  %v560_v7 = vsel (!%p172_p10), %vm279_vm0, %v478_v4, 0  ;;  %v2255_v12 = vld [vmem:[%s2884_s1 + $0x4] ss:$0 sps:$4 sm:$0xcc] (!%p172_p10)  }
  0x11   : > { %v281_v3 = vsel (!%p172_p10), %vm279_vm0, %v262_v2, 0  ;;  %v394_v9 = vsel (!%p172_p10), %vm279_vm0, %v224_v5, 0  ;;  %v680_v16 = vrot.slane (!%p172_p10), %v2255_v12, 2  ;;  %vm504_vm3 = vsmask.f32 (!%p172_p10), 7424  ;;  %s199_s7 = sand.u32 (!%p172_p10), 1, %s2355_s13  }
  0x12   : > { %1987 = vmatpush3.bf16.msra.mxu0 (!%p172_p10), %v281_v3  ;;  %2185 = vmatpush3.bf16.msra.mxu1 (!%p172_p10), %v281_v3  ;;  %v790_v27 = vld [vmem:[%s2884_s1 + $0x8] sm:$0x3] (!%p172_p10)  ;;  %vm1448_vm4 = vcmask (!%p172_p10), 1046528   ;;  %s2186_s8 = smul.u32 (!%p172_p10), 36, %s199_s7  ;;  %s2375_s26 = smov (!%p172_p10), [#allocation2]  }
  0x13   : > { %2030 = vmatprep.subr.bf16.mxu0 (!%p172_p10), %v2373_v1  ;;  %2008 = vmatprep.subr.bf16.mxu1 (!%p172_p10), %v2373_v1  ;;  %v697_v22 = vsel (!%p172_p10), %vm279_vm0, %v680_v16, 0  ;;  %v830_v32 = vsel (!%p172_p10), %vm279_vm0, %v790_v27, 0  ;;  %s2188_s10 = smul.u32 (!%p172_p10), 576, %s2363_s15  ;;  %s2297_s27 = sshll.u32 (!%p172_p10), %s2375_s26, 4  ;;  %s2298_s27 = int_to_ptr.vmem [resolvable:$false] %s2297_s27 }
  0x15   : > { %s2830_s21 = scalar_lea.hbm (!%p172_p10), %s2886_s3, %s2188_s10 }
  0x16   : > { %s203_s28 = scalar_select %p202_p11, %s2363_s15, 1 }
  0x17   : > { %s2837_s15 = scalar_lea.sflag [#allocation3], %s199_s7 }
  0x18   : > { %s2187_s29 = smul.u32 176, %s203_s28  ;;  %s2299_s28 = scalar_lea.vmem %s2298_s27, 1152 }
  0x1a   : > { %s2476_s9 = scalar_lea.vmem %s2883_s0, %s2187_s29 }
  0x1b   : > { %v2249_v6 = vld [vmem:[%s2476_s9 + $0x2c] sm:$0xff]   ;;  %v2250_v8 = vld [vmem:[%s2476_s9 + $0x44] sm:$0xff]   ;;  %v2251_v10 = vld [vmem:[%s2476_s9 + $0x34] sm:$0xff]  }
  0x1c   : > { %1989 = vmatmul.mubr.msk.bf16.vlgmr.msra.gmra.mrb[0].mxu0 %vm263_vm2, %v2249_v6  ;;  %2001 = vmatmul.mubr.msk.bf16.vlgmr.msra.gmra.mrb[0].mxu1 %vm263_vm2, %v2250_v8  ;;  %v2252_v11 = vld [vmem:[%s2476_s9 + $0x4c] ss:$0 sps:$4 sm:$0xff]   ;;  %v2257_v13 = vld [vmem:[%s2476_s9] sm:$0xff]   ;;  %v2260_v23 = vld [vmem:[%s2476_s9 + $0x10] sm:$0xff]  }
  0x1d   : > { %2031 = vmatpush3.bf16.msra.mxu0 %v560_v7  ;;  %2009 = vmatpush3.bf16.msra.mxu1 %v394_v9  ;;  %v2258_v14 = vld [vmem:[%s2476_s9 + $0x8] sm:$0xff]   ;;  %v508_v15 = vshll.u32 %v2257_v13, 16  ;;  %v2253_v17 = vld [vmem:[%s2476_s9 + $0x3c] sm:$0xff]   ;;  %v506_v19 = vshrl.u32 %v2257_v13, 16  ;;  %v521_v28 = vshll.u32 %v2260_v23, 16  ;;  %v525_v35 = vshrl.u32 %v2260_v23, 16 }
  0x1e   : > { %1992 = vmatprep.mubr.msk.bf16.mxu0 %vm2374_vm1, %v2373_v1  ;;  %2004 = vmatprep.mubr.msk.bf16.mxu1 %vm2374_vm1, %v2373_v1  ;;  %v2254_v18 = vld [vmem:[%s2476_s9] sm:$0xff]   ;;  %v513_v21 = vshll.u32 %v2258_v14, 16  ;;  %v2514_v26 = vld [vmem:[%s2476_s9 + $0x18] sm:$0xff]   ;;  %v2256_v29 = vld [vmem:[%s2476_s9 + $0x8] sm:$0xff]   ;;  %v517_v31 = vshrl.u32 %v2258_v14, 16 }
  0x1f   : > { %2052 = vmatprep.subr.bf16.mxu1 %v2373_v1  ;;  %2074 = vmatprep.subr.bf16.mxu0 %v2373_v1  ;;  %v510_v20 = vrot.slane %v508_v15, 1  ;;  %v529_v33 = vshll.u32 %v2514_v26, 16  ;;  %v523_v34 = vrot.slane %v521_v28, 1  ;;  %v2276_v36 = vld [vmem:[%s2476_s9 + $0x58] sm:$0xff]   ;;  %v2277_v37 = vld [vmem:[%s2476_s9 + $0x60] sm:$0xff]   ;;  %v533_v40 = vshrl.u32 %v2514_v26, 16 }
  0x20   : > { %v515_v25 = vrot.slane %v513_v21, 1  ;;  %v2529_v39 = vld [vmem:[%s2476_s9 + $0x20] sm:$0x1f]   ;;  %v2279_v41 = vld [vmem:[%s2476_s9 + $0x68] sm:$0xff]   ;;  %v950_v42 = vshrl.u32 %v2276_v36, 16  ;;  %v952_v43 = vshll.u32 %v2276_v36, 16 }
  0x21   : > { %v511_v24 = vor.u32 %v510_v20, %v506_v19  ;;  %v957_v44 = vshll.u32 %v2277_v37, 16  ;;  %v961_v45 = vshrl.u32 %v2277_v37, 16  ;;  %v2259_v46 = vld [vmem:[%s2476_s9 + $0x10] sm:$0xff]   ;;  %v531_v47 = vrot.slane %v529_v33, 1  ;;  %v1091_v49 = vld [vmem:[%s2476_s9 + $0x4] sm:$0xf] }
  0x22   : > { %v519_v38 = vor.u32 %v517_v31, %v515_v25  ;;  %v965_v48 = vshll.u32 %v2279_v41, 16  ;;  %v2541_v50 = vld [vmem:[%s2476_s9 + $0x8] sm:$0xf]  ;;  %v954_v51 = vrot.slane %v952_v43, 1  ;;  %v537_v55 = vshll.u32 %v2529_v39, 16  ;;  %v2547_v57 = vld [vmem:[%s2476_s9 + $0xc] sm:$0xff]  }
  0x23   : > { %v516_v30 = vsel %vm504_vm3, %v511_v24, %v515_v25  ;;  %v959_v52 = vrot.slane %v957_v44, 1  ;;  %v1850_v53 = vcombine.low %v1091_v49, %v2541_v50  ;;  %v2282_v58 = vld [vmem:[%s2476_s9 + $0x70] sm:$0xff]   ;;  %v527_v63 = vor.u32 %v525_v35, %v523_v34  ;;  %v2567_v13 = vld [vmem:[%s2476_s9 + $0x78] sm:$0x1f]   ;;  %v2586_v28 = vld [vmem:[%s2476_s9 + $0x24] sm:$0x1f]  }
  0x24   : > { %1993 = vmatmul.mubr.msk.bf16.gmra.mrb[4].mxu0 %vm263_vm2, %v2251_v10  ;;  %2005 = vmatmul.mubr.msk.bf16.gmra.mrb[4].mxu1 %vm263_vm2, %v2252_v11  ;;  %v524_v54 = vsel %vm504_vm3, %v519_v38, %v523_v34  ;;  %v967_v56 = vrot.slane %v965_v48, 1  ;;  %v955_v59 = vor.u32 %v954_v51, %v950_v42  ;;  %v1135_v0 = vshll.u32 %v2547_v57, 16  ;;  %v2552_v4 = vld [vmem:[%s2476_s9 + $0x14] sm:$0xff]   ;;  %v2570_v14 = vld [vmem:[%s2476_s9 + $0x1c] sm:$0xff]  }
  0x25   : > { %1996 = vmatprep.mubr.msk.bf16.mxu0 %vm2374_vm1, %v2373_v1  ;;  %2010 = vmatprep.mubr.msk.bf16.mxu1 %vm2374_vm1, %v2373_v1  ;;  %v963_v60 = vor.u32 %v961_v45, %v959_v52  ;;  %v1128_v61 = vshrl.u32 %v1850_v53, 16  ;;  %v1130_v62 = vshll.u32 %v1850_v53, 16  ;;  %v969_v2 = vshrl.u32 %v2279_v41, 16  ;;  %v2287_v35 = vld [vmem:[%s2476_s9 + $0x30] sm:$0xff]   ;;  %v2288_v38 = vld [vmem:[%s2476_s9 + $0x38] sm:$0xff]   ;;  %v2289_v45 = vld [vmem:[%s2476_s9 + $0x40] sm:$0xff]  }
  0x26   : > { %v973_v3 = vshll.u32 %v2282_v58, 16  ;;  %v2556_v5 = vsel %vm504_vm3, %v955_v59, %v959_v52  ;;  %v1139_v8 = vshrl.u32 %v2547_v57, 16  ;;  %v1137_v9 = vrot.slane %v1135_v0, 1 }
  0x27   : > { %v2559_v6 = vsel %vm504_vm3, %v963_v60, %v967_v56  ;;  %v1132_v7 = vrot.slane %v1130_v62, 1  ;;  %v971_v10 = vor.u32 %v969_v2, %v967_v56  ;;  %v1143_v12 = vshll.u32 %v2552_v4, 16  ;;  %v2263_v60 = vld [vmem:[%s2476_s9 + $0x20] ss:$0 sps:$4 sm:$0xff]  }
  0x28   : > { %v975_v11 = vrot.slane %v973_v3, 1  ;;  %v977_v16 = vshrl.u32 %v2282_v58, 16  ;;  %v1141_v19 = vor.u32 %v1139_v8, %v1137_v9  ;;  %v981_v21 = vshll.u32 %v2567_v13, 16  ;;  %v2621_v58 = vld [vmem:[%s2476_s9 + $0x50] sm:$0x1f]  }
  0x29   : > { %v1133_v15 = vor.u32 %v1132_v7, %v1128_v61  ;;  %v1145_v20 = vrot.slane %v1143_v12, 1  ;;  %v532_v23 = vsel %vm504_vm3, %v527_v63, %v531_v47  ;;  %v1151_v27 = vshll.u32 %v2570_v14, 16  ;;  %v2266_v7 = vld [vmem:[%s2884_s1 + $0x8] ss:$0 sps:$4 sm:$0xcc]  }
  0x2a   : > { %v979_v25 = vor.u32 %v977_v16, %v975_v11  ;;  %v1159_v34 = vshll.u32 %v2586_v28, 16  ;;  %v535_v36 = vor.u32 %v533_v40, %v531_v47  ;;  %v539_v41 = vrot.slane %v537_v55, 1 }
  0x2b   : > { %v2582_v24 = vsel %vm504_vm3, %v1133_v15, %v1137_v9  ;;  %v1153_v33 = vrot.slane %v1151_v27, 1  ;;  %v1302_v26 = vshrl.u32 %v2287_v35, 16  ;;  %v1304_v40 = vshll.u32 %v2287_v35, 16  ;;  %v2270_v27 = vld [vmem:[%s2476_s9 + $0x8c] sm:$0xff]   ;;  %v2273_v35 = vld [vmem:[%s2476_s9 + $0x78] ss:$0 sps:$4 sm:$0xff]  }
  0x2c   : > { %1997 = vmatmul.mubr.msk.bf16.gmra.mrb[8].mxu0 %vm263_vm2, %v2253_v17  ;;  %2011 = vmatmul.mubr.msk.bf16.vlgmr.msra.gmra.mrb[8].mxu1 %vm263_vm2, %v2254_v18  ;;  %v1147_v17 = vshrl.u32 %v2552_v4, 16  ;;  %v2576_v18 = vsel %vm504_vm3, %v971_v10, %v975_v11  ;;  %v2607_v44 = vrot.slane %v1159_v34, 1  ;;  %v1309_v47 = vshll.u32 %v2288_v38, 16  ;;  %v2274_v34 = vld [vmem:[%s2476_s9 + $0x9c] sm:$0xff]  }
  0x2d   : > { %2032 = vmatprep.mubr.msk.bf16.mxu0 %vm2374_vm1, %v2373_v1  ;;  %2053 = vmatpush3.bf16.msra.mxu1 %v697_v22  ;;  %v2261_v22 = vld [vmem:[%s2476_s9 + $0x18] sm:$0xff]   ;;  %v1313_v48 = vshrl.u32 %v2288_v38, 16  ;;  %v1317_v51 = vshll.u32 %v2289_v45, 16  ;;  %v1321_v52 = vshrl.u32 %v2289_v45, 16  ;;  %v1306_v53 = vrot.slane %v1304_v40, 1 }
  0x2e   : > { %2014 = vmatprep.mubr.msk.bf16.mxu1 %vm2374_vm1, %v2373_v1  ;;  %2096 = vmatprep.subr.bf16.mxu1 %v2373_v1  ;;  %v1149_v31 = vor.u32 %v1147_v17, %v1145_v20  ;;  %v540_v61 = vsel %vm504_vm3, %v535_v36, %v539_v41  ;;  %v1333_v3 = vshll.u32 %v2621_v58, 16  ;;  %v541_v11 = vshrl.u32 %v2529_v39, 16  ;;  %v2278_v36 = vld [vmem:[%s2884_s1 + $0xc] ss:$0 sps:$4 sm:$0xcc]  }
  0x2f   : > { %v1319_v56 = vrot.slane %v1317_v51, 1  ;;  %v1307_v62 = vor.u32 %v1306_v53, %v1302_v26  ;;  %v991_v39 = vrot.slane %v2266_v7, 2  ;;  %v1343_v38 = vrot.slane %v2278_v36, 2  ;;  %v1444_v45 = vld [vmem:[%s2884_s1 + $0x10] sm:$0x3] }
  0x30   : > { %v2605_v42 = vsel %vm504_vm3, %v1149_v31, %v1153_v33  ;;  %v2640_v15 = vrot.slane %v1333_v3, 1  ;;  %v543_v17 = vor.u32 %v541_v11, %v539_v41  ;;  %v2269_v31 = vld [vmem:[%s2476_s9 + $0x68] sm:$0xff]   ;;  %v2275_v41 = vld [vmem:[%s2476_s9 + $0xa4] ss:$0 sps:$4 sm:$0xff]   ;;  %v1337_v26 = vshrl.u32 %v2621_v58, 16 }
  0x31   : > { %v1323_v2 = vor.u32 %v1321_v52, %v1319_v56  ;;  %v1456_v40 = vrot.slane %v2586_v28, 1 }
  0x34   : > { %2033 = vmatmul.mubr.msk.bf16.vlgmr.msra.gmra.mrb[12].mxu0 %vm263_vm2, %v516_v30  ;;  %2015 = vmatmul.mubr.msk.bf16.gmra.mrb[12].mxu1 %vm263_vm2, %v2256_v29  ;;  %v2589_v29 = vsel %vm504_vm3, %v1141_v19, %v1145_v20  ;;  %v2591_v30 = vrot.slane %v981_v21, 1  ;;  %v2265_v19 = vld [vmem:[%s2476_s9 + $0x58] sm:$0xff]   ;;  %v1008_v20 = vsel %vm279_vm0, %v991_v39, 0  ;;  %v1101_v21 = vld [vmem:[%s2884_s1 + $0xc] sm:$0x3] }
  0x35   : > { %2075 = vmatpush3.bf16.msra.mxu0 %v830_v32  ;;  %2018 = vmatprep.mubr.msk.bf16.mxu1 %vm2374_vm1, %v2373_v1  ;;  %v1155_v32 = vshrl.u32 %v2570_v14, 16 }
  0x36   : > { %2036 = vmatprep.mubr.msk.bf16.mxu0 %vm2374_vm1, %v2373_v1  ;;  %2118 = vmatprep.subr.bf16.mxu0 %v2373_v1  ;;  %v2600_v37 = vsel %vm504_vm3, %v979_v25, %v2591_v30  ;;  %v1182_v25 = vsel %vm279_vm0, %v1101_v21, 0 }
  0x37   : > { %v1157_v43 = vor.u32 %v1155_v32, %v1153_v33  ;;  %v2272_v32 = vld [vmem:[%s2476_s9 + $0x94] sm:$0xff]  }
  0x38   : > { %v2271_v33 = vld [vmem:[%s2476_s9 + $0x70] sm:$0xff]  }
  0x39   : > { %v2618_v49 = vsel %vm504_vm3, %v1157_v43, %v2607_v44  ;;  %v1360_v43 = vsel %vm279_vm0, %v1343_v38, 0 }
  0x3c   : > { %2037 = vmatmul.mubr.msk.bf16.gmra.mrb[16].mxu0 %vm263_vm2, %v524_v54  ;;  %2019 = vmatmul.mubr.msk.bf16.gmra.mrb[16].mxu1 %vm263_vm2, %v2259_v46  ;;  %v2291_v46 = vld [vmem:[%s2476_s9 + $0x48] sm:$0xff]   ;;  %v1311_v54 = vrot.slane %v1309_v47, 1 }
  0x3d   : > { %2040 = vmatprep.mubr.msk.bf16.mxu0 %vm2374_vm1, %v2373_v1  ;;  %2022 = vmatprep.mubr.msk.bf16.mxu1 %vm2374_vm1, %v2373_v1  ;;  %v1325_v55 = vshll.u32 %v2291_v46, 16  ;;  %v1329_v59 = vshrl.u32 %v2291_v46, 16  ;;  %v1474_v46 = vsel %vm279_vm0, %v1444_v45, 0 }
  0x3e   : > { %v1315_v63 = vor.u32 %v1313_v48, %v1311_v54  ;;  %v2630_v8 = vsel %vm504_vm3, %v1307_v62, %v1311_v54 }
  0x3f   : > { %v1327_v0 = vrot.slane %v1325_v55, 1 }
  0x40   : > { %v2633_v9 = vsel %vm504_vm3, %v1315_v63, %v1319_v56 }
  0x41   : > { %v1331_v10 = vor.u32 %v1329_v59, %v1327_v0  ;;  %v2638_v12 = vsel %vm504_vm3, %v1323_v2, %v1327_v0 }
  0x43   : > { %v2649_v16 = vsel %vm504_vm3, %v1331_v10, %v2640_v15 }
  0x44   : > { %2041 = vmatmul.mubr.msk.bf16.gmra.mrb[20].mxu0 %vm263_vm2, %v532_v23  ;;  %2023 = vmatmul.mubr.msk.bf16.gmra.mrb[20].mxu1 %vm263_vm2, %v2261_v22  ;;  %v2268_v22 = vld [vmem:[%s2476_s9 + $0x84] sm:$0xff]  }
  0x45   : > { %2044 = vmatprep.mubr.msk.bf16.mxu0 %vm2374_vm1, %v2373_v1  ;;  %2026 = vmatprep.mubr.msk.bf16.mxu1 %vm2374_vm1, %v2373_v1  ;;  %v2267_v23 = vld [vmem:[%s2476_s9 + $0x60] sm:$0xff]  }
  0x4c   : > { %2045 = vmatmul.mubr.msk.bf16.gmra.mrb[24].mxu0 %vm263_vm2, %v540_v61  ;;  %2027 = vmatmul.mubr.msk.bf16.gmra.mrb[24].mxu1 %vm263_vm2, %v2263_v60 }
  0x4d   : > { %2048 = vmatprep.mubr.msk.bf16.mxu0 %vm2374_vm1, %v2373_v1  ;;  %2054 = vmatprep.mubr.msk.bf16.mxu1 %vm2374_vm1, %v2373_v1 }
  0x54   : > { %2049 = vmatmul.mubr.msk.bf16.gmra.mrb[28].mxu0 %vm263_vm2, %v543_v17  ;;  %2055 = vmatmul.mubr.msk.bf16.vlgmr.msra.gmra.mrb[28].mxu1 %vm263_vm2, %v2265_v19 }
  0x55   : > { %2076 = vmatprep.mubr.msk.bf16.mxu0 %vm2374_vm1, %v2373_v1  ;;  %2097 = vmatpush3.bf16.msra.mxu1 %v1008_v20 }
  0x56   : > { %2058 = vmatprep.mubr.msk.bf16.mxu1 %vm2374_vm1, %v2373_v1  ;;  %2140 = vmatprep.subr.bf16.mxu1 %v2373_v1 }
  0x5c   : > { %2077 = vmatmul.mubr.msk.bf16.vlgmr.msra.gmra.mrb[32].mxu0 %vm263_vm2, %v2268_v22  ;;  %2059 = vmatmul.mubr.msk.bf16.gmra.mrb[32].mxu1 %vm263_vm2, %v2267_v23 }
  0x5d   : > { %2119 = vmatpush3.bf16.msra.mxu0 %v1182_v25  ;;  %2062 = vmatprep.mubr.msk.bf16.mxu1 %vm2374_vm1, %v2373_v1 }
  0x5e   : > { %2080 = vmatprep.mubr.msk.bf16.mxu0 %vm2374_vm1, %v2373_v1  ;;  %2162 = vmatprep.subr.bf16.mxu0 %v2373_v1 }
  0x64   : > { %2081 = vmatmul.mubr.msk.bf16.gmra.mrb[36].mxu0 %vm263_vm2, %v2270_v27  ;;  %2063 = vmatmul.mubr.msk.bf16.gmra.mrb[36].mxu1 %vm263_vm2, %v2269_v31 }
  0x65   : > { %2084 = vmatprep.mubr.msk.bf16.mxu0 %vm2374_vm1, %v2373_v1  ;;  %2066 = vmatprep.mubr.msk.bf16.mxu1 %vm2374_vm1, %v2373_v1 }
  0x6c   : > { %2085 = vmatmul.mubr.msk.bf16.gmra.mrb[40].mxu0 %vm263_vm2, %v2272_v32  ;;  %2067 = vmatmul.mubr.msk.bf16.gmra.mrb[40].mxu1 %vm263_vm2, %v2271_v33 }
  0x6d   : > { %2088 = vmatprep.mubr.msk.bf16.mxu0 %vm2374_vm1, %v2373_v1  ;;  %2070 = vmatprep.mubr.msk.bf16.mxu1 %vm2374_vm1, %v2373_v1 }
  0x74   : > { %2089 = vmatmul.mubr.msk.bf16.gmra.mrb[44].mxu0 %vm263_vm2, %v2274_v34  ;;  %2071 = vmatmul.mubr.msk.bf16.gmra.mrb[44].mxu1 %vm263_vm2, %v2273_v35 }
  0x75   : > { %2092 = vmatprep.mubr.msk.bf16.mxu0 %vm2374_vm1, %v2373_v1  ;;  %2098 = vmatprep.mubr.msk.bf16.mxu1 %vm2374_vm1, %v2373_v1 }
  0x7c   : > { %2093 = vmatmul.mubr.msk.bf16.gmra.mrb[48].mxu0 %vm263_vm2, %v2275_v41  ;;  %2099 = vmatmul.mubr.msk.bf16.vlgmr.msra.gmra.mrb[48].mxu1 %vm263_vm2, %v2556_v5  ;;  %v985_v5 = vshrl.u32 %v2567_v13, 16 }
  0x7d   : > { %2120 = vmatprep.mubr.msk.bf16.mxu0 %vm2374_vm1, %v2373_v1  ;;  %2141 = vmatpush3.bf16.msra.mxu1 %v1360_v43 }
  0x7e   : > { %2102 = vmatprep.mubr.msk.bf16.mxu1 %vm2374_vm1, %v2373_v1 }
  0x84   : > { %2121 = vmatmul.mubr.msk.bf16.vlgmr.msra.gmra.mrb[52].mxu0 %vm263_vm2, %v2582_v24  ;;  %2103 = vmatmul.mubr.msk.bf16.gmra.mrb[52].mxu1 %vm263_vm2, %v2559_v6  ;;  %v987_v6 = vor.u32 %v985_v5, %v2591_v30  ;;  %v1443_v24 = vld [vmem:[%s2476_s9 + $0x4] sm:$0xe]  ;;  %s2809_s9 = scalar_lea.vmem [#allocation2], %s2186_s8 }
  0x85   : > { %2163 = vmatpush3.bf16.msra.mxu0 %v1474_v46  ;;  %2106 = vmatprep.mubr.msk.bf16.mxu1 %vm2374_vm1, %v2373_v1  ;;  %s1643_s11 = sshll.u32 %s2809_s9, 4  ;;  %s2832_s11 = int_to_ptr.vmem [resolvable:$true] %s1643_s11 }
  0x86   : > { %2124 = vmatprep.mubr.msk.bf16.mxu0 %vm2374_vm1, %v2373_v1  ;;  %s2293_s23 = scalar_lea.vmem %s2832_s11, 576  ;;  %p2300_p1 = scmp.lt.s32.totalorder %s2832_s11, %s2298_s27 }
  0x87   : > { %p2294_p12 = scmp.ne.s32.totalorder %s2832_s11, %s2293_s23  ;;  %p2301_p2 = scmp.lt.s32.totalorder %s2299_s28, %s2293_s23 }
  0x89   : > { %p2295_p13 = pnand %p2294_p12, %p2438_p4  ;;  %p2302_p3 = por %p2301_p2, %p2300_p1 }
  0x8b   : > { %p2296_p0 = pneg %p2295_p13 }
  0x8c   : > { %2125 = vmatmul.mubr.msk.bf16.gmra.mrb[56].mxu0 %vm263_vm2, %v2589_v29  ;;  %2107 = vmatmul.mubr.msk.bf16.gmra.mrb[56].mxu1 %vm263_vm2, %v2576_v18  ;;  %v1163_v18 = vshrl.u32 %v2586_v28, 16  ;;  %v1881_v29 = vcombine.low %v1443_v24, %v2541_v50  ;;  %v1452_v50 = vrot.slane %v2552_v4, 1 }
  0x8d   : > { %2128 = vmatprep.mubr.msk.bf16.mxu0 %vm2374_vm1, %v2373_v1  ;;  %2110 = vmatprep.mubr.msk.bf16.mxu1 %vm2374_vm1, %v2373_v1  ;;  %p2303_p5 = pnand %p2302_p3, %p2296_p0 }
  0x8e   : > { %v1165_v13 = vor.u32 %v1163_v18, %v2607_v44  ;;  %v1449_v30 = vrot.slane %v1881_v29, 1  ;;  %v1454_v44 = vrot.slane %v2570_v14, 1  ;;  %v1339_v14 = vor.u32 %v1337_v26, %v2640_v15 }
  0x90   : > { %v1455_v4 = vsel %vm1448_vm4, %v1452_v50, %v1454_v44  ;;  %v1457_v47 = vsel %vm1448_vm4, %v1454_v44, %v1456_v40 }
  0x94   : > { %2129 = vmatmul.mubr.msk.bf16.gmra.mrb[60].mxu0 %vm263_vm2, %v2605_v42  ;;  %2111 = vmatmul.mubr.msk.bf16.gmra.mrb[60].mxu1 %vm263_vm2, %v2600_v37  ;;  %v1450_v37 = vrot.slane %v2547_v57, 1 }
  0x95   : > { %2132 = vmatprep.mubr.msk.bf16.mxu0 %vm2374_vm1, %v2373_v1  ;;  %2114 = vmatprep.mubr.msk.bf16.mxu1 %vm2374_vm1, %v2373_v1 }
  0x96   : > { %v1451_v42 = vsel %vm1448_vm4, %v1449_v30, %v1450_v37  ;;  %v1453_v57 = vsel %vm1448_vm4, %v1450_v37, %v1452_v50 }
  0x9c   : > { %2133 = vmatmul.mubr.msk.bf16.gmra.mrb[64].mxu0 %vm263_vm2, %v2618_v49  ;;  %2115 = vmatmul.mubr.msk.bf16.gmra.mrb[64].mxu1 %vm263_vm2, %v987_v6 }
  0x9d   : > { %2136 = vmatprep.mubr.msk.bf16.mxu0 %vm2374_vm1, %v2373_v1  ;;  %2142 = vmatprep.mubr.msk.bf16.mxu1 %vm2374_vm1, %v2373_v1 }
  0xa4   : > { %2137 = vmatmul.mubr.msk.bf16.gmra.mrb[68].mxu0 %vm263_vm2, %v1165_v13  ;;  %2143 = vmatmul.mubr.msk.bf16.vlgmr.msra.gmra.mrb[68].mxu1 %vm263_vm2, %v2630_v8 }
  0xa5   : > { %2164 = vmatprep.mubr.msk.bf16.mxu0 %vm2374_vm1, %v2373_v1  ;;  %2146 = vmatprep.mubr.msk.bf16.mxu1 %vm2374_vm1, %v2373_v1 }
  0xac   : > { %2165 = vmatmul.mubr.msk.bf16.vlgmr.msra.gmra.mrb[72].mxu0 %vm263_vm2, %v1451_v42  ;;  %2147 = vmatmul.mubr.msk.bf16.gmra.mrb[72].mxu1 %vm263_vm2, %v2633_v9 }
  0xad   : > { %2168 = vmatprep.mubr.msk.bf16.mxu0 %vm2374_vm1, %v2373_v1  ;;  %2150 = vmatprep.mubr.msk.bf16.mxu1 %vm2374_vm1, %v2373_v1 }
  0xb4   : > { %2169 = vmatmul.mubr.msk.bf16.gmra.mrb[76].mxu0 %vm263_vm2, %v1453_v57  ;;  %2151 = vmatmul.mubr.msk.bf16.gmra.mrb[76].mxu1 %vm263_vm2, %v2638_v12 }
  0xb5   : > { %2172 = vmatprep.mubr.msk.bf16.mxu0 %vm2374_vm1, %v2373_v1  ;;  %2154 = vmatprep.mubr.msk.bf16.mxu1 %vm2374_vm1, %v2373_v1 }
  0xbc   : > { %2173 = vmatmul.mubr.msk.bf16.gmra.mrb[80].mxu0 %vm263_vm2, %v1455_v4  ;;  %2155 = vmatmul.mubr.msk.bf16.gmra.mrb[80].mxu1 %vm263_vm2, %v2649_v16 }
  0xbd   : > { %2176 = vmatprep.mubr.msk.bf16.mxu0 %vm2374_vm1, %v2373_v1  ;;  %2158 = vmatprep.mubr.msk.bf16.mxu1 %vm2374_vm1, %v2373_v1 }
  0xc4   : > { %2177 = vmatmul.mubr.msk.bf16.gmra.mrb[84].mxu0 %vm263_vm2, %v1457_v47  ;;  %2159 = vmatmul.mubr.msk.bf16.gmra.mrb[84].mxu1 %vm263_vm2, %v1339_v14 }
  0xc5   : > { %2180 = vmatprep.mubr.msk.bf16.mxu0 %vm2374_vm1, %v2373_v1 }
  0xcc   : > { %2181 = vmatmul.mubr.msk.bf16.gmra.mrb[88].mxu0 %vm263_vm2, %v1456_v40 }
  0xef   : > { %v317_v48 = vpop.f32.mrb[0].mxu0  ;;  %v341_v51 = vpop.f32.mrb[0].mxu1 }
  0xf0   : > { %v1990_v49 = vpop.f32.mrb[1].mxu0  ;;  %v2002_v52 = vpop.f32.mrb[1].mxu1 }
  0xf1   : > { %v320_v28 = vpop.f32.mrb[2].mxu0  ;;  %v344_v54 = vpop.f32.mrb[2].mxu1 }
  0xf2   : > { %v1991_v53 = vpop.f32.mrb[3].mxu0  ;;  %v2003_v55 = vpop.f32.mrb[3].mxu1 }
  0xf7   : > { %v325_v56 = vpop.f32.mrb[4].mxu0  ;;  %v349_v59 = vpop.f32.mrb[4].mxu1 }
  0xf8   : > { %v1994_v58 = vpop.f32.mrb[5].mxu0  ;;  %v2006_v61 = vpop.f32.mrb[5].mxu1 }
  0xf9   : > { %v328_v60 = vpop.f32.mrb[6].mxu0  ;;  %v352_v63 = vpop.f32.mrb[6].mxu1 }
  0xfa   : > { %v1995_v62 = vpop.f32.mrb[7].mxu0  ;;  %v2007_v0 = vpop.f32.mrb[7].mxu1 }
  0xff   : > { %v333_v2 = vpop.f32.mrb[8].mxu0  ;;  %v430_v1 = vpop.f32.mrb[8].mxu1 }
 0x100   : > { %v1998_v3 = vpop.f32.mrb[9].mxu0  ;;  %v431_v7 = vadd.f32 %v430_v1, %v317_v48  ;;  %v2012_v8 = vpop.f32.mrb[9].mxu1 }
 0x101   : > { %v336_v9 = vpop.f32.mrb[10].mxu0  ;;  %v433_v10 = vpop.f32.mrb[10].mxu1 }
 0x102   : > { %v1999_v11 = vpop.f32.mrb[11].mxu0  ;;  %v434_v12 = vadd.f32 %v433_v10, %v320_v28  ;;  %v2013_v15 = vpop.f32.mrb[11].mxu1 }
 0x107   : > { %v596_v16 = vpop.f32.mrb[12].mxu0  ;;  %v438_v39 = vpop.f32.mrb[12].mxu1 }
 0x108   : > { %v634_v17 = vadd.f32 %v596_v16, %v431_v7  ;;  %v2034_v19 = vpop.f32.mrb[13].mxu0  ;;  %v439_v20 = vadd.f32 %v438_v39, %v325_v56  ;;  %v2016_v21 = vpop.f32.mrb[13].mxu1 }
 0x109   : > { %v599_v22 = vpop.f32.mrb[14].mxu0  ;;  %v441_v23 = vpop.f32.mrb[14].mxu1 }
 0x10a   : > { %v635_v25 = vadd.f32 %v599_v22, %v434_v12  ;;  %v2035_v27 = vpop.f32.mrb[15].mxu0  ;;  %v442_v31 = vadd.f32 %v441_v23, %v328_v60  ;;  %v2017_v32 = vpop.f32.mrb[15].mxu1 }
 0x10f   : > { %v604_v33 = vpop.f32.mrb[16].mxu0  ;;  %v446_v34 = vpop.f32.mrb[16].mxu1 }
 0x110   : > { %v636_v35 = vadd.f32 %v604_v33, %v439_v20  ;;  %v2038_v36 = vpop.f32.mrb[17].mxu0  ;;  %v447_v38 = vadd.f32 %v446_v34, %v333_v2  ;;  %v2020_v41 = vpop.f32.mrb[17].mxu1 }
 0x111   : > { %v607_v43 = vpop.f32.mrb[18].mxu0  ;;  %v449_v45 = vpop.f32.mrb[18].mxu1 }
 0x112   : > { %v637_v46 = vadd.f32 %v607_v43, %v442_v31  ;;  %v2039_v5 = vpop.f32.mrb[19].mxu0  ;;  %v450_v6 = vadd.f32 %v449_v45, %v336_v9  ;;  %v2021_v18 = vpop.f32.mrb[19].mxu1 }
 0x117   : > { %v612_v24 = vpop.f32.mrb[20].mxu0  ;;  %v454_v13 = vpop.f32.mrb[20].mxu1 }
 0x118   : > { %v638_v29 = vadd.f32 %v612_v24, %v447_v38  ;;  %v2042_v30 = vpop.f32.mrb[21].mxu0  ;;  %v455_v37 = vadd.f32 %v454_v13, %v341_v51  ;;  %v2024_v42 = vpop.f32.mrb[21].mxu1 }
 0x119   : > { %v615_v50 = vpop.f32.mrb[22].mxu0  ;;  %v457_v57 = vpop.f32.mrb[22].mxu1 }
 0x11a   : > { %v639_v44 = vadd.f32 %v615_v50, %v450_v6  ;;  %v2043_v4 = vpop.f32.mrb[23].mxu0  ;;  %v458_v26 = vadd.f32 %v457_v57, %v344_v54  ;;  %v2025_v40 = vpop.f32.mrb[23].mxu1 }
 0x11f   : > { %v620_v14 = vpop.f32.mrb[24].mxu0  ;;  %v462_v47 = vpop.f32.mrb[24].mxu1 }
 0x120   : > { %v640_v48 = vadd.f32 %v620_v14, %v455_v37  ;;  %v2046_v49 = vpop.f32.mrb[25].mxu0  ;;  %v463_v28 = vadd.f32 %v462_v47, %v349_v59  ;;  %v2028_v53 = vpop.f32.mrb[25].mxu1 }
 0x121   : > { %v623_v52 = vpop.f32.mrb[26].mxu0  ;;  %v465_v58 = vpop.f32.mrb[26].mxu1 }
 0x122   : > { %v641_v55 = vadd.f32 %v623_v52, %v458_v26  ;;  %v2047_v56 = vpop.f32.mrb[27].mxu0  ;;  %v2029_v60 = vpop.f32.mrb[27].mxu1 }
 0x127   : > { %v628_v61 = vpop.f32.mrb[28].mxu0  ;;  %v733_v62 = vpop.f32.mrb[28].mxu1 }
 0x128   : > { %v642_v51 = vadd.f32 %v628_v61, %v463_v28  ;;  %v2050_v63 = vpop.f32.mrb[29].mxu0  ;;  %v771_v0 = vadd.f32 %v733_v62, %v634_v17  ;;  %v2056_v2 = vpop.f32.mrb[29].mxu1 }
 0x129   : > { %v631_v1 = vpop.f32.mrb[30].mxu0  ;;  %v736_v54 = vpop.f32.mrb[30].mxu1 }
 0x12a   : > { %v2051_v3 = vpop.f32.mrb[31].mxu0  ;;  %v772_v7 = vadd.f32 %v736_v54, %v635_v25  ;;  %v2057_v8 = vpop.f32.mrb[31].mxu1 }
 0x12f   : > { %v866_v9 = vpop.f32.mrb[32].mxu0  ;;  %v741_v10 = vpop.f32.mrb[32].mxu1 }
 0x130   : > { %v904_v59 = vadd.f32 %v866_v9, %v771_v0  ;;  %v2078_v11 = vpop.f32.mrb[33].mxu0  ;;  %v773_v12 = vadd.f32 %v741_v10, %v636_v35  ;;  %v2060_v15 = vpop.f32.mrb[33].mxu1 }
 0x131   : > { %v869_v16 = vpop.f32.mrb[34].mxu0  ;;  %v744_v39 = vpop.f32.mrb[34].mxu1 }
 0x132   : > { %v905_v19 = vadd.f32 %v869_v16, %v772_v7  ;;  %v2079_v20 = vpop.f32.mrb[35].mxu0  ;;  %v774_v21 = vadd.f32 %v744_v39, %v637_v46  ;;  %v2061_v22 = vpop.f32.mrb[35].mxu1 }
 0x137   : > { %v874_v23 = vpop.f32.mrb[36].mxu0  ;;  %v749_v17 = vpop.f32.mrb[36].mxu1 }
 0x138   : > { %v906_v27 = vadd.f32 %v874_v23, %v773_v12  ;;  %v2082_v31 = vpop.f32.mrb[37].mxu0  ;;  %v775_v32 = vadd.f32 %v749_v17, %v638_v29  ;;  %v2064_v33 = vpop.f32.mrb[37].mxu1 }
 0x139   : > { %v877_v25 = vpop.f32.mrb[38].mxu0  ;;  %v752_v34 = vpop.f32.mrb[38].mxu1 }
 0x13a   : > { %v907_v36 = vadd.f32 %v877_v25, %v774_v21  ;;  %v2083_v38 = vpop.f32.mrb[39].mxu0  ;;  %v776_v41 = vadd.f32 %v752_v34, %v639_v44  ;;  %v2065_v43 = vpop.f32.mrb[39].mxu1 }
 0x13f   : > { %v882_v35 = vpop.f32.mrb[40].mxu0  ;;  %v757_v45 = vpop.f32.mrb[40].mxu1 }
 0x140   : > { %v908_v5 = vadd.f32 %v882_v35, %v775_v32  ;;  %v2086_v6 = vpop.f32.mrb[41].mxu0  ;;  %v777_v18 = vadd.f32 %v757_v45, %v640_v48  ;;  %v2068_v24 = vpop.f32.mrb[41].mxu1 }
 0x141   : > { %v885_v46 = vpop.f32.mrb[42].mxu0  ;;  %v760_v13 = vpop.f32.mrb[42].mxu1 }
 0x142   : > { %v909_v30 = vadd.f32 %v885_v46, %v776_v41  ;;  %v2087_v37 = vpop.f32.mrb[43].mxu0  ;;  %v778_v42 = vadd.f32 %v760_v13, %v641_v55  ;;  %v2069_v50 = vpop.f32.mrb[43].mxu1 }
 0x147   : > { %v890_v29 = vpop.f32.mrb[44].mxu0  ;;  %v765_v57 = vpop.f32.mrb[44].mxu1 }
 0x148   : > { %v910_v4 = vadd.f32 %v890_v29, %v777_v18  ;;  %v2090_v26 = vpop.f32.mrb[45].mxu0  ;;  %v779_v40 = vadd.f32 %v765_v57, %v642_v51  ;;  %v2072_v44 = vpop.f32.mrb[45].mxu1 }
 0x149   : > { %v893_v14 = vpop.f32.mrb[46].mxu0  ;;  %v768_v28 = vpop.f32.mrb[46].mxu1 }
 0x14a   : > { %v911_v47 = vadd.f32 %v893_v14, %v778_v42  ;;  %v2091_v49 = vpop.f32.mrb[47].mxu0  ;;  %v2073_v52 = vpop.f32.mrb[47].mxu1 }
 0x14f   : > { %v898_v53 = vpop.f32.mrb[48].mxu0  ;;  %v1044_v56 = vpop.f32.mrb[48].mxu1 }
 0x150   : > { %v912_v48 = vadd.f32 %v898_v53, %v779_v40  ;;  %v2094_v58 = vpop.f32.mrb[49].mxu0  ;;  %v1082_v60 = vadd.f32 %v1044_v56, %v904_v59  ;;  %v2100_v61 = vpop.f32.mrb[49].mxu1 }
 0x151   : > { %v901_v62 = vpop.f32.mrb[50].mxu0  ;;  %v1047_v55 = vpop.f32.mrb[50].mxu1 }
 0x152   : > { %v2095_v63 = vpop.f32.mrb[51].mxu0  ;;  %v1083_v0 = vadd.f32 %v1047_v55, %v905_v19  ;;  %v2101_v2 = vpop.f32.mrb[51].mxu1  ;;  %v2802_v62 = vld [vmem:[%s2885_s2] ss:$0 sm:$0xff] }
 0x157   : > { %v1218_v1 = vpop.f32.mrb[52].mxu0  ;;  %v1052_v54 = vpop.f32.mrb[52].mxu1 }
 0x158   : > { %v1256_v51 = vadd.f32 %v1218_v1, %v1082_v60  ;;  %v2122_v3 = vpop.f32.mrb[53].mxu0  ;;  %v1084_v7 = vadd.f32 %v1052_v54, %v906_v27  ;;  %v2104_v8 = vpop.f32.mrb[53].mxu1 }
 0x159   : > { %v1221_v9 = vpop.f32.mrb[54].mxu0  ;;  %v1055_v10 = vpop.f32.mrb[54].mxu1 }
 0x15a   : > { %v1257_v11 = vadd.f32 %v1221_v9, %v1083_v0  ;;  %v2123_v12 = vpop.f32.mrb[55].mxu0  ;;  %v1085_v15 = vadd.f32 %v1055_v10, %v907_v36  ;;  %v2105_v16 = vpop.f32.mrb[55].mxu1 }
 0x15f   : > { %v1226_v39 = vpop.f32.mrb[56].mxu0  ;;  %v1060_v59 = vpop.f32.mrb[56].mxu1 }
 0x160   : > { %v1258_v20 = vadd.f32 %v1226_v39, %v1084_v7  ;;  %v2126_v21 = vpop.f32.mrb[57].mxu0  ;;  %v1086_v22 = vadd.f32 %v1060_v59, %v908_v5  ;;  %v2108_v23 = vpop.f32.mrb[57].mxu1 }
 0x161   : > { %v1229_v19 = vpop.f32.mrb[58].mxu0  ;;  %v1063_v17 = vpop.f32.mrb[58].mxu1 }
 0x162   : > { %v1259_v31 = vadd.f32 %v1229_v19, %v1085_v15  ;;  %v2127_v32 = vpop.f32.mrb[59].mxu0  ;;  %v1087_v33 = vadd.f32 %v1063_v17, %v909_v30  ;;  %v2109_v25 = vpop.f32.mrb[59].mxu1 }
 0x167   : > { %v1234_v27 = vpop.f32.mrb[60].mxu0  ;;  %v1068_v34 = vpop.f32.mrb[60].mxu1 }
 0x168   : > { %v1260_v38 = vadd.f32 %v1234_v27, %v1086_v22  ;;  %v2130_v41 = vpop.f32.mrb[61].mxu0  ;;  %v1088_v43 = vadd.f32 %v1068_v34, %v910_v4  ;;  %v2112_v35 = vpop.f32.mrb[61].mxu1 }
 0x169   : > { %v1237_v36 = vpop.f32.mrb[62].mxu0  ;;  %v1071_v45 = vpop.f32.mrb[62].mxu1 }
 0x16a   : > { %v1261_v6 = vadd.f32 %v1237_v36, %v1087_v33  ;;  %v2131_v18 = vpop.f32.mrb[63].mxu0  ;;  %v1089_v24 = vadd.f32 %v1071_v45, %v911_v47  ;;  %v2113_v46 = vpop.f32.mrb[63].mxu1 }
 0x16f   : > { %v1242_v5 = vpop.f32.mrb[64].mxu0  ;;  %v1076_v13 = vpop.f32.mrb[64].mxu1 }
 0x170   : > { %v2793_v37 = vadd.f32 %v1242_v5, %v1088_v43  ;;  %v2134_v42 = vpop.f32.mrb[65].mxu0  ;;  %v1090_v50 = vadd.f32 %v1076_v13, %v912_v48  ;;  %v2116_v29 = vpop.f32.mrb[65].mxu1 }
 0x171   : > { %v1245_v30 = vpop.f32.mrb[66].mxu0  ;;  %v1079_v40 = vpop.f32.mrb[66].mxu1 }
 0x172   : > { %v2795_v57 = vadd.f32 %v1245_v30, %v1089_v24  ;;  %v2135_v26 = vpop.f32.mrb[67].mxu0  ;;  %v2117_v4 = vpop.f32.mrb[67].mxu1 }
 0x177   : > { %v1250_v14 = vpop.f32.mrb[68].mxu0  ;;  %v1396_v49 = vpop.f32.mrb[68].mxu1 }
 0x178   : > { %v2797_v44 = vadd.f32 %v1250_v14, %v1090_v50  ;;  %v2138_v47 = vpop.f32.mrb[69].mxu0  ;;  %v1434_v28 = vadd.f32 %v1396_v49, %v1256_v51  ;;  %v2144_v52 = vpop.f32.mrb[69].mxu1 }
 0x179   : > { %v1253_v53 = vpop.f32.mrb[70].mxu0  ;;  %v1399_v56 = vpop.f32.mrb[70].mxu1 }
 0x17a   : > { %v2139_v58 = vpop.f32.mrb[71].mxu0  ;;  %v1435_v60 = vadd.f32 %v1399_v56, %v1257_v11  ;;  %v2145_v48 = vpop.f32.mrb[71].mxu1 }
 0x17f   : > { %v1510_v61 = vpop.f32.mrb[72].mxu0  ;;  %v1404_v55 = vpop.f32.mrb[72].mxu1 }
 0x180   : > { %v1548_v63 = vadd.f32 %v1510_v61, %v1434_v28  ;;  %v2166_v0 = vpop.f32.mrb[73].mxu0  ;;  %v1436_v2 = vadd.f32 %v1404_v55, %v1258_v20  ;;  %v2148_v1 = vpop.f32.mrb[73].mxu1 }
 0x181   : > { %v1513_v54 = vpop.f32.mrb[74].mxu0  ;;  %v1407_v3 = vpop.f32.mrb[74].mxu1 }
 0x182   : > { %v1564_v51 = vadd.f32 %v2802_v62, %v1548_v63  ;;  %v1549_v7 = vadd.f32 %v1513_v54, %v1435_v60  ;;  %v2167_v8 = vpop.f32.mrb[75].mxu0  ;;  %v1437_v9 = vadd.f32 %v1407_v3, %v1259_v31  ;;  %v2149_v10 = vpop.f32.mrb[75].mxu1 }
 0x184   : > { %v1565_v11 = vadd.f32 %v2802_v62, %v1549_v7  ;;  %v1573_v12 = vmax.f32 %v1564_v51, 0.0 }
 0x186   : > { %v1574_v15 = vmax.f32 %v1565_v11, 0.0 }
 0x187   : > { %v1518_v16 = vpop.f32.mrb[76].mxu0  ;;  %v1412_v59 = vpop.f32.mrb[76].mxu1 }
 0x188   : > { %v1912_v39 = vpack.c.bf16 %v1574_v15, %v1573_v12  ;;  %v1550_v21 = vadd.f32 %v1518_v16, %v1436_v2  ;;  %v2170_v20 = vpop.f32.mrb[77].mxu0  ;;  %v1438_v22 = vadd.f32 %v1412_v59, %v1260_v38  ;;  %v2152_v23 = vpop.f32.mrb[77].mxu1 }
 0x189   : > { %v1521_v19 = vpop.f32.mrb[78].mxu0  ;;  %v1415_v31 = vpop.f32.mrb[78].mxu1 }
 0x18a   : > { %1913 = vst [vmem:[%s2809_s9] sm:$0xff] %v1912_v39   ;;  %v1566_v17 = vadd.f32 %v2802_v62, %v1550_v21  ;;  %v1551_v32 = vadd.f32 %v1521_v19, %v1437_v9  ;;  %v2171_v33 = vpop.f32.mrb[79].mxu0  ;;  %v1439_v25 = vadd.f32 %v1415_v31, %v1261_v6  ;;  %v2153_v27 = vpop.f32.mrb[79].mxu1 }
 0x18c   : > { %v1567_v34 = vadd.f32 %v2802_v62, %v1551_v32  ;;  %v1575_v41 = vmax.f32 %v1566_v17, 0.0 }
 0x18e   : > { %v1576_v43 = vmax.f32 %v1567_v34, 0.0 }
 0x18f   : > { %v1526_v35 = vpop.f32.mrb[80].mxu0  ;;  %v1420_v36 = vpop.f32.mrb[80].mxu1 }
 0x190   : > { %v1917_v38 = vpack.c.bf16 %v1576_v43, %v1575_v41  ;;  %v1552_v45 = vadd.f32 %v1526_v35, %v1438_v22  ;;  %v2174_v18 = vpop.f32.mrb[81].mxu0  ;;  %v1440_v24 = vadd.f32 %v1420_v36, %v2793_v37  ;;  %v2156_v46 = vpop.f32.mrb[81].mxu1 }
 0x191   : > { %v1529_v5 = vpop.f32.mrb[82].mxu0  ;;  %v1423_v42 = vpop.f32.mrb[82].mxu1 }
 0x192   : > { %1929 = vst [vmem:[%s2809_s9 + $0x8] sm:$0xff] %v1917_v38   ;;  %v1568_v13 = vadd.f32 %v2802_v62, %v1552_v45  ;;  %v1553_v6 = vadd.f32 %v1529_v5, %v1439_v25  ;;  %v2175_v50 = vpop.f32.mrb[83].mxu0  ;;  %v1441_v30 = vadd.f32 %v1423_v42, %v2795_v57  ;;  %v2157_v29 = vpop.f32.mrb[83].mxu1 }
 0x194   : > { %v1569_v26 = vadd.f32 %v2802_v62, %v1553_v6  ;;  %v1577_v40 = vmax.f32 %v1568_v13, 0.0 }
 0x196   : > { %v1578_v4 = vmax.f32 %v1569_v26, 0.0 }
 0x197   : > { %v1534_v14 = vpop.f32.mrb[84].mxu0  ;;  %v1428_v47 = vpop.f32.mrb[84].mxu1 }
 0x198   : > { %v1922_v49 = vpack.c.bf16 %v1578_v4, %v1577_v40  ;;  %v1554_v37 = vadd.f32 %v1534_v14, %v1440_v24  ;;  %v2178_v28 = vpop.f32.mrb[85].mxu0  ;;  %v1442_v52 = vadd.f32 %v1428_v47, %v2797_v44  ;;  %v2160_v56 = vpop.f32.mrb[85].mxu1 }
 0x199   : > { %v1537_v53 = vpop.f32.mrb[86].mxu0  ;;  %v1431_v48 = vpop.f32.mrb[86].mxu1 }
 0x19a   : > { %1930 = vst [vmem:[%s2809_s9 + $0x10] sm:$0xff] %v1922_v49   ;;  %v1570_v58 = vadd.f32 %v2802_v62, %v1554_v37  ;;  %v1555_v57 = vadd.f32 %v1537_v53, %v1441_v30  ;;  %v2179_v60 = vpop.f32.mrb[87].mxu0  ;;  %v2161_v61 = vpop.f32.mrb[87].mxu1 }
 0x19c   : > { %v1571_v55 = vadd.f32 %v2802_v62, %v1555_v57  ;;  %v1579_v63 = vmax.f32 %v1570_v58, 0.0 }
 0x19e   : > { %v1580_v0 = vmax.f32 %v1571_v55, 0.0 }
 0x19f   : > { %v1542_v2 = vpop.f32.mrb[88].mxu0 }
 0x1a0   : > { %v1927_v44 = vpack.c.bf16 %v1580_v0, %v1579_v63  ;;  %v1556_v1 = vadd.f32 %v1542_v2, %v1442_v52  ;;  %v2182_v54 = vpop.f32.mrb[89].mxu0 }
 0x1a1   : > { %v1545_v51 = vpop.f32.mrb[90].mxu0 }
 0x1a2   : > { %1931 = vst [vmem:[%s2809_s9 + $0x18] sm:$0xff] %v1927_v44   ;;  %v1572_v3 = vadd.f32 %v2802_v62, %v1556_v1  ;;  %v2183_v7 = vpop.f32.mrb[91].mxu0 }
 0x1a4   : > { %v1581_v8 = vmax.f32 %v1572_v3, 0.0 }
 0x1a6   : > { %v1908_v9 = vpack.c.bf16 %v1581_v8, %v1581_v8 }
 0x1a8   : > { %1627 = vst [vmem:[%s2809_s9 + $0x20] sm:$0xf] %v1908_v9 }
 0x1a9   : > { %2306 = shalt.err (!%p2303_p5)
}
 0x1aa   : > { %s2307_s29 = scalar_lea.hbm %s2830_s21, 576  ;;  %s2311_s5 = scalar_lea.hbm %s2886_s3, 1152 }
 0x1ab   : > { %p2308_p6 = scmp.ne.s32.totalorder %s2830_s21, %s2307_s29  ;;  %p2312_p10 = scmp.lt.u32.totalorder %s2830_s21, %s2886_s3 }
 0x1ac   : > { %p2313_p11 = scmp.lt.u32.totalorder %s2311_s5, %s2307_s29  ;;  %p2315_p13 = scmp.lt.u32.totalorder %s2307_s29, %s2830_s21 }
 0x1ad   : > { %p2309_p7 = pnand %p2308_p6, %p2438_p4 }
 0x1ae   : > { %p2314_p12 = por %p2313_p11, %p2312_p10 }
 0x1af   : > { %p2310_p9 = pneg %p2309_p7 }
 0x1b0   : > { %p2316_p0 = por %p2315_p13, %p2314_p12 }
 0x1b2   : > { %p2317_p1 = pnand %p2316_p0, %p2310_p9 }
 0x1b4   : > { %2320 = shalt.err (!%p2317_p1)
}
 0x1b5   : > { %s2376_s8 = smov 64   ;;  %s2377_s9 = smov 4  }
 0x1b6   : > { %2189 = dma.vmem_to_hbm [thread:$0]  (%p2438_p4), %s2832_s11, 576, %s2830_s21, %s2837_s15, %s2376_s8, %s2376_s8, %s2377_s9  }
 0x1b7 PF: > { %p2195_p2 = scmp.ge.s32.totalorder %s2371_s17, 2  ;;  %s1658_s10 = sand.u32 1, %s2351_s12  }
 0x1b8   : > { %s1659_s18 = scalar_lea.sflag [#allocation3], %s1658_s10 }
 0x1b9   : > { %p2192_p3 = pnand %p2195_p2, %p2445_p8 }
 0x1bb   : > { %2346 = dma.done.wait (!%p2192_p3), %s1659_s18, 576  }
 0x1bc   : > { %2348 = vsyncadd (!%p2192_p3), %s1659_s18, 4294966720  ;;  %s16_s17 = sadd.s32 1, %s2371_s17   ;;  %s2889_s12 = smov %s2355_s13 }
 0x1bd   : > { %p13_p5 = scmp.ge.s32.totalorder %s16_s17, 4   ;;  %s2890_s13 = smov %s2359_s14 }
 0x1be   : > { %s2891_s14 = smov %s2451_s25  ;;  %s2892_s15 = smov %s2367_s16 }
 0x1bf   : > { %s2893_s16 = smov %s2895_s20  ;;  %15 = sbr.rel (!%p13_p5) target bundleno = 4 (0x4), region = 76 }
 0x1c6   :  { %1664 = vsyncpa [#allocation3], 1 }
 0x1c7   :  { %1666 = vsyncpa [#allocation3 + $0x1], 1 }

</bundles_post_ra>
